<compile_context>
chip_gen: v5e
topology: v5e:2x2
jax: 0.10.0
libtpu: 0.0.40
codegen_flags: <defaults>
</compile_context>

<pallas_src>
import jax
import jax.numpy as jnp
from jax.experimental import pallas as pl
from jax.experimental.pallas import tpu as pltpu


def _relu(x):
    return jnp.maximum(x, 0.0)


def _round_up(a, b):
    return (a + b - 1) // b * b


def cvae_kernel(
    # per-batch-tile activations (pipelined over the batch grid)
    x_ref, ce_ref,
    # VMEM-resident weights/biases (index_map always (0, 0))
    e1w_ref,
    e2w_ref, e2b_ref,
    e3w_ref, e3b_ref,
    hw_ref, ctab_ref,
    d1w_ref,
    d2w_ref, d2b_ref,
    d3w_ref, d3b_ref,
    d4w_ref, d4b_ref,
    # outputs
    xhat_ref, head_ref,
):
    f32 = jnp.float32
    bf16 = jnp.bfloat16
    Hd = e2w_ref.shape[0]
    ZH = hw_ref.shape[1]          # packed head lane width (128)
    LV_OFF = ZH // 2              # logvar lane offset inside the packed head
    CP = ctab_ref.shape[0]        # padded number of classes (16)
    EW = ce_ref.shape[1] - CP     # eps lane width (16)

    x = x_ref[...].astype(bf16)
    ce = ce_ref[...]
    c = ce[:, :CP]                      # bf16 one-hot class (zero-padded lanes)
    eps = ce[:, CP:].astype(f32)        # (T, EW) standard-normal noise

    # Per-row class contributions with layer biases folded in: one K=CP MXU push.
    # (Valid because c is one-hot: c @ (Wc + b) == c @ Wc + b.)
    allb = jnp.dot(c, ctab_ref[...], preferred_element_type=f32)
    b_e1 = allb[:, :Hd]
    b_head = allb[:, Hd:Hd + ZH]
    b_d1 = allb[:, Hd + ZH:]

    # --- encoder MLP ---
    h = _relu(jnp.dot(x, e1w_ref[...], preferred_element_type=f32) + b_e1)
    h = _relu(jnp.dot(h.astype(bf16), e2w_ref[...], preferred_element_type=f32) + e2b_ref[...])
    h = _relu(jnp.dot(h.astype(bf16), e3w_ref[...], preferred_element_type=f32) + e3b_ref[...])

    # --- packed mu|logvar head: mu in lanes [0, Z), logvar in lanes [LV_OFF, LV_OFF+Z) ---
    head = jnp.dot(h.astype(bf16), hw_ref[...], preferred_element_type=f32) + b_head

    # --- reparameterize on a narrow EW-lane window ---
    #   z = mu + exp(0.5*logvar) * eps   (== sqrt(exp(logvar)) * eps, stable form)
    mu_n = head[:, :EW]
    lv_n = head[:, LV_OFF:LV_OFF + EW]
    z = (mu_n + jnp.exp(0.5 * lv_n) * eps).astype(bf16)   # (T, EW)

    # --- decoder MLP (first layer is a K=EW matmul; class+bias pre-folded into b_d1) ---
    d = _relu(jnp.dot(z, d1w_ref[...], preferred_element_type=f32) + b_d1)
    d = _relu(jnp.dot(d.astype(bf16), d2w_ref[...], preferred_element_type=f32) + d2b_ref[...])
    d = _relu(jnp.dot(d.astype(bf16), d3w_ref[...], preferred_element_type=f32) + d3b_ref[...])
    logits = jnp.dot(d.astype(bf16), d4w_ref[...], preferred_element_type=f32) + d4b_ref[...]

    xhat_ref[...] = jax.nn.sigmoid(logits)
    head_ref[...] = head


def init_params(key, input_size, num_classes, latent_size):
    """Deterministic parameter init. Weights stored as (in, out) in f32."""
    hidden = input_size // 2
    shapes = {
        "e1wx": (input_size, hidden), "e1wc": (num_classes, hidden), "e1b": (1, hidden),
        "e2w": (hidden, hidden), "e2b": (1, hidden),
        "e3w": (hidden, hidden), "e3b": (1, hidden),
        "muwh": (hidden, latent_size), "muwc": (num_classes, latent_size), "mub": (1, latent_size),
        "lvwh": (hidden, latent_size), "lvwc": (num_classes, latent_size), "lvb": (1, latent_size),
        "d1wz": (latent_size, hidden), "d1wc": (num_classes, hidden), "d1b": (1, hidden),
        "d2w": (hidden, hidden), "d2b": (1, hidden),
        "d3w": (hidden, hidden), "d3b": (1, hidden),
        "d4w": (hidden, input_size), "d4b": (1, input_size),
    }
    params = {}
    keys = jax.random.split(key, len(shapes))
    for k, (name, shp) in zip(keys, sorted(shapes.items())):
        params[name] = (0.05 * jax.random.normal(k, shp)).astype(jnp.float32)
    return params


@jax.jit
def cvae_forward(x, c, eps, params):
    """x: (N, 1, H, W) f32, c: (N, num_classes) f32 one-hot, eps: (N, Z) f32."""
    N, _, Himg, Wimg = x.shape
    D = Himg * Wimg
    Z = eps.shape[1]
    nc = c.shape[1]
    Hd = params["e2w"].shape[0]
    f32 = jnp.float32
    bf16 = jnp.bfloat16

    ZH = 128                       # packed mu|logvar head lane width
    LV_OFF = ZH // 2
    CP = max(16, _round_up(nc, 16))     # one-hot lane width (padded classes)
    EW = max(16, _round_up(Z, 16))      # eps lane width
    assert Z <= LV_OFF and LV_OFF + EW <= ZH, "latent_size must be <= 64"

    x_flat = x.reshape(N, D).astype(f32)

    # ---- batch tiling: tile 512 ≈ 85% of HBM roofline; keep >=2 tiles when N allows ----
    TILE_CAP = 512
    TILE_N = min(TILE_CAP, _round_up(max(-(-N // 2), 8), 8))
    Npad = _round_up(N, TILE_N)
    n_tiles = Npad // TILE_N

    # only pad x when strictly necessary (avoids an extra HBM read+write pass)
    x_p = x_flat if Npad == N else jnp.pad(x_flat, ((0, Npad - N), (0, 0)))

    # packed per-row side input: one-hot class + eps, both bf16, 32 lanes total
    ce = jnp.zeros((Npad, CP + EW), bf16)
    ce = ce.at[:N, :nc].set(c.astype(bf16))
    ce = ce.at[:N, CP:CP + Z].set(eps.astype(bf16))

    # ---- fused class table: rows = classes, cols = [e1 | packed-head | d1], biases folded ----
    # (slices are 128-lane aligned when Hd is a multiple of 128, e.g. Hd=128 here)
    ctab = jnp.zeros((CP, Hd + ZH + Hd), f32)
    ctab = ctab.at[:nc, :Hd].set(params["e1wc"] + params["e1b"])
    ctab = ctab.at[:nc, Hd:Hd + Z].set(params["muwc"] + params["mub"])
    ctab = ctab.at[:nc, Hd + LV_OFF:Hd + LV_OFF + Z].set(params["lvwc"] + params["lvb"])
    ctab = ctab.at[:nc, Hd + ZH:].set(params["d1wc"] + params["d1b"])
    ctab = ctab.astype(bf16)

    # ---- pack weights: bf16 for the MXU, packed mu|logvar head, EW-row decoder entry ----
    e1w = params["e1wx"].astype(bf16)
    e2w = params["e2w"].astype(bf16)
    e3w = params["e3w"].astype(bf16)
    hw = jnp.zeros((Hd, ZH), bf16)
    hw = hw.at[:, :Z].set(params["muwh"].astype(bf16))
    hw = hw.at[:, LV_OFF:LV_OFF + Z].set(params["lvwh"].astype(bf16))
    d1w = jnp.zeros((EW, Hd), bf16).at[:Z, :].set(params["d1wz"].astype(bf16))
    d2w = params["d2w"].astype(bf16)
    d3w = params["d3w"].astype(bf16)
    d4w = params["d4w"].astype(bf16)
    e2b, e3b = params["e2b"], params["e3b"]
    d2b, d3b, d4b = params["d2b"], params["d3b"], params["d4b"]

    act_args = [x_p, ce]
    w_args = [e1w, e2w, e2b, e3w, e3b, hw, ctab, d1w, d2w, d2b, d3w, d3b, d4w, d4b]

    def act_spec(feat):
        return pl.BlockSpec((TILE_N, feat), lambda i: (i, 0))

    def w_spec(w):
        # constant block index -> DMA'd once, VMEM-resident across the whole batch grid
        return pl.BlockSpec(w.shape, lambda i: (0, 0))

    in_specs = [act_spec(D), act_spec(CP + EW)] + [w_spec(w) for w in w_args]
    out_specs = (act_spec(D), act_spec(ZH))
    out_shapes = (
        jax.ShapeDtypeStruct((Npad, D), f32),    # x_hat (flat)
        jax.ShapeDtypeStruct((Npad, ZH), f32),   # packed [mu | logvar] head
    )

    # advisory cost estimate so XLA doesn't treat the fused call as zero-cost
    flops = 2 * Npad * (D * Hd + 4 * Hd * Hd + Hd * ZH + CP * (2 * Hd + ZH)
                        + EW * Hd + Hd * D)
    transcendentals = Npad * (EW + D)
    w_bytes = sum(int(w.size) * w.dtype.itemsize for w in w_args)
    act_bytes = Npad * (4 * D + 2 * (CP + EW)) + Npad * (4 * D + 4 * ZH)
    cost = pl.CostEstimate(flops=flops, transcendentals=transcendentals,
                           bytes_accessed=w_bytes + act_bytes)

    xhat_p, head_p = pl.pallas_call(
        cvae_kernel,
        grid=(n_tiles,),
        in_specs=in_specs,
        out_specs=out_specs,
        out_shape=out_shapes,
        compiler_params=pltpu.CompilerParams(
            dimension_semantics=("parallel",),
            vmem_limit_bytes=32 * 1024 * 1024),
        cost_estimate=cost,
    )(*act_args, *w_args)

    x_hat = xhat_p[:N].reshape(N, 1, Himg, Wimg)
    mu = head_p[:N, :Z]
    logvar = head_p[:N, LV_OFF:LV_OFF + Z]
    return x_hat, mu, logvar


def reference_forward(x, c, eps, params, *, mirror_kernel=False):
    """Pure-JAX reference matching the PyTorch module's forward.

    mirror_kernel=True mirrors the kernel's bf16 casts (matmul inputs, folded bf16
    class tables, bf16-carried eps) for a tight check; False is the exact f32 module
    math (loose check; only delta is bf16 rounding).
    """
    N, _, H, _ = x.shape
    f32 = jnp.float32
    bf16 = jnp.bfloat16

    def dot(a, w):
        if mirror_kernel:
            a = a.astype(bf16)
            w = w.astype(bf16)
        return jnp.dot(a, w, preferred_element_type=f32)

    def cbias(wc, b):
        if mirror_kernel:
            return jnp.dot(c.astype(bf16), (wc + b).astype(bf16),
                           preferred_element_type=f32)
        return c @ wc + b

    eps_use = eps.astype(bf16).astype(f32) if mirror_kernel else eps

    x_flat = x.reshape(N, -1)
    h = jnp.maximum(dot(x_flat, params["e1wx"]) + cbias(params["e1wc"], params["e1b"]), 0.0)
    h = jnp.maximum(dot(h, params["e2w"]) + params["e2b"], 0.0)
    h = jnp.maximum(dot(h, params["e3w"]) + params["e3b"], 0.0)
    mu = dot(h, params["muwh"]) + cbias(params["muwc"], params["mub"])
    logvar = dot(h, params["lvwh"]) + cbias(params["lvwc"], params["lvb"])
    z = mu + jnp.exp(0.5 * logvar) * eps_use   # == sqrt(exp(logvar)) * eps, stable form
    d = jnp.maximum(dot(z, params["d1wz"]) + cbias(params["d1wc"], params["d1b"]), 0.0)
    d = jnp.maximum(dot(d, params["d2w"]) + params["d2b"], 0.0)
    d = jnp.maximum(dot(d, params["d3w"]) + params["d3b"], 0.0)
    x_hat = jax.nn.sigmoid(dot(d, params["d4w"]) + params["d4b"])
    return x_hat.reshape(N, 1, H, H), mu, logvar


if __name__ == "__main__":
    # Small shapes consistent with the module: input (N, 1, H, W), H*W = input_size.
    N = 2
    H = 16
    input_size = H * H          # 256 -> hidden = 128
    num_classes = 10
    latent_size = 15

    key = jax.random.PRNGKey(0)
    k_x, k_c, k_eps, k_params = jax.random.split(key, 4)

    x = jax.random.uniform(k_x, (N, 1, H, H), dtype=jnp.float32)
    labels = jax.random.randint(k_c, (N,), 0, num_classes)
    c = jax.nn.one_hot(labels, num_classes, dtype=jnp.float32)
    eps = jax.random.normal(k_eps, (N, latent_size), dtype=jnp.float32)

    params = init_params(k_params, input_size, num_classes, latent_size)

    x_hat, mu, logvar = cvae_forward(x, c, eps, params)
    jax.block_until_ready((x_hat, mu, logvar))

    assert x_hat.shape == (N, 1, H, H)
    assert mu.shape == (N, latent_size) and logvar.shape == (N, latent_size)

    # Tight check vs a reference mirroring the kernel's bf16 casts / folded class table.
    xh_b, mu_b, lv_b = reference_forward(x, c, eps, params, mirror_kernel=True)
    assert jnp.allclose(x_hat, xh_b, atol=2e-3, rtol=2e-3)
    assert jnp.allclose(mu, mu_b, atol=2e-3, rtol=2e-3)
    assert jnp.allclose(logvar, lv_b, atol=2e-3, rtol=2e-3)

    # Loose check vs the exact f32 module math (delta = bf16 weight/eps rounding only).
    xh_f, mu_f, lv_f = reference_forward(x, c, eps, params, mirror_kernel=False)
    assert jnp.allclose(x_hat, xh_f, atol=3e-2, rtol=3e-2)
    assert jnp.allclose(mu, mu_f, atol=3e-2, rtol=3e-2)
    assert jnp.allclose(logvar, lv_f, atol=3e-2, rtol=3e-2)

    print("KERNEL_OK")
</pallas_src>

<mosaic_0001>
module attributes {stable_mosaic.version = 11 : i64} {
  func.func @cvae_kernel(%arg0: i32, %arg1: memref<8x256xf32, #tpu.memory_space<vmem>>, %arg2: memref<8x32xbf16, #tpu.memory_space<vmem>>, %arg3: memref<256x128xbf16, #tpu.memory_space<vmem>>, %arg4: memref<128x128xbf16, #tpu.memory_space<vmem>>, %arg5: memref<1x128xf32, #tpu.memory_space<vmem>>, %arg6: memref<128x128xbf16, #tpu.memory_space<vmem>>, %arg7: memref<1x128xf32, #tpu.memory_space<vmem>>, %arg8: memref<128x128xbf16, #tpu.memory_space<vmem>>, %arg9: memref<16x384xbf16, #tpu.memory_space<vmem>>, %arg10: memref<16x128xbf16, #tpu.memory_space<vmem>>, %arg11: memref<128x128xbf16, #tpu.memory_space<vmem>>, %arg12: memref<1x128xf32, #tpu.memory_space<vmem>>, %arg13: memref<128x128xbf16, #tpu.memory_space<vmem>>, %arg14: memref<1x128xf32, #tpu.memory_space<vmem>>, %arg15: memref<128x256xbf16, #tpu.memory_space<vmem>>, %arg16: memref<1x256xf32, #tpu.memory_space<vmem>>, %arg17: memref<8x256xf32, #tpu.memory_space<vmem>>, %arg18: memref<8x128xf32, #tpu.memory_space<vmem>>) attributes {dimension_semantics = [#tpu.dimension_semantics<parallel>], iteration_bounds = array<i64: 1>, scalar_prefetch = 0 : i64, scratch_operands = 0 : i64, tpu.core_type = #tpu.core_type<tc>, window_params = [{transform_indices = @transform_0, window_bounds = array<i64: 8, 256>}, {transform_indices = @transform_1, window_bounds = array<i64: 8, 32>}, {pipeline_mode = #tpu.pipeline_mode<synchronous>, transform_indices = @transform_2, window_bounds = array<i64: 256, 128>}, {pipeline_mode = #tpu.pipeline_mode<synchronous>, transform_indices = @transform_3, window_bounds = array<i64: 128, 128>}, {pipeline_mode = #tpu.pipeline_mode<synchronous>, transform_indices = @transform_4, window_bounds = array<i64: 1, 128>}, {pipeline_mode = #tpu.pipeline_mode<synchronous>, transform_indices = @transform_5, window_bounds = array<i64: 128, 128>}, {pipeline_mode = #tpu.pipeline_mode<synchronous>, transform_indices = @transform_6, window_bounds = array<i64: 1, 128>}, {pipeline_mode = #tpu.pipeline_mode<synchronous>, transform_indices = @transform_7, window_bounds = array<i64: 128, 128>}, {pipeline_mode = #tpu.pipeline_mode<synchronous>, transform_indices = @transform_8, window_bounds = array<i64: 16, 384>}, {pipeline_mode = #tpu.pipeline_mode<synchronous>, transform_indices = @transform_9, window_bounds = array<i64: 16, 128>}, {pipeline_mode = #tpu.pipeline_mode<synchronous>, transform_indices = @transform_10, window_bounds = array<i64: 128, 128>}, {pipeline_mode = #tpu.pipeline_mode<synchronous>, transform_indices = @transform_11, window_bounds = array<i64: 1, 128>}, {pipeline_mode = #tpu.pipeline_mode<synchronous>, transform_indices = @transform_12, window_bounds = array<i64: 128, 128>}, {pipeline_mode = #tpu.pipeline_mode<synchronous>, transform_indices = @transform_13, window_bounds = array<i64: 1, 128>}, {pipeline_mode = #tpu.pipeline_mode<synchronous>, transform_indices = @transform_14, window_bounds = array<i64: 128, 256>}, {pipeline_mode = #tpu.pipeline_mode<synchronous>, transform_indices = @transform_15, window_bounds = array<i64: 1, 256>}, {transform_indices = @transform_16, window_bounds = array<i64: 8, 256>}, {transform_indices = @transform_17, window_bounds = array<i64: 8, 128>}]} {
    %c0 = arith.constant 0 : index
    %c0_0 = arith.constant 0 : index
    %0 = vector.load %arg1[%c0, %c0_0] : memref<8x256xf32, #tpu.memory_space<vmem>>, vector<8x256xf32>
    %1 = arith.truncf %0 : vector<8x256xf32> to vector<8x256xbf16>
    %c0_1 = arith.constant 0 : index
    %c0_2 = arith.constant 0 : index
    %2 = vector.load %arg2[%c0_1, %c0_2] : memref<8x32xbf16, #tpu.memory_space<vmem>>, vector<8x32xbf16>
    %3 = vector.extract_strided_slice %2 {offsets = [0, 0], sizes = [8, 16], strides = [1, 1]} : vector<8x32xbf16> to vector<8x16xbf16>
    %4 = vector.extract_strided_slice %2 {offsets = [0, 16], sizes = [8, 16], strides = [1, 1]} : vector<8x32xbf16> to vector<8x16xbf16>
    %5 = arith.extf %4 : vector<8x16xbf16> to vector<8x16xf32>
    %c0_3 = arith.constant 0 : index
    %c0_4 = arith.constant 0 : index
    %6 = vector.load %arg9[%c0_3, %c0_4] : memref<16x384xbf16, #tpu.memory_space<vmem>>, vector<16x384xbf16>
    %cst = arith.constant dense<0.000000e+00> : vector<8x384xf32>
    %7 = tpu.matmul %3, %6, %cst {dimension_numbers = #tpu.dot_dimension_numbers<[1], [0], [0], [1], [0, 0, 1, 1], [], []>} : vector<8x16xbf16>, vector<16x384xbf16>, vector<8x384xf32> -> vector<8x384xf32>
    %8 = vector.extract_strided_slice %7 {offsets = [0, 0], sizes = [8, 128], strides = [1, 1]} : vector<8x384xf32> to vector<8x128xf32>
    %9 = vector.extract_strided_slice %7 {offsets = [0, 128], sizes = [8, 128], strides = [1, 1]} : vector<8x384xf32> to vector<8x128xf32>
    %10 = vector.extract_strided_slice %7 {offsets = [0, 256], sizes = [8, 128], strides = [1, 1]} : vector<8x384xf32> to vector<8x128xf32>
    %c0_5 = arith.constant 0 : index
    %c0_6 = arith.constant 0 : index
    %11 = vector.load %arg3[%c0_5, %c0_6] : memref<256x128xbf16, #tpu.memory_space<vmem>>, vector<256x128xbf16>
    %cst_7 = arith.constant dense<0.000000e+00> : vector<8x128xf32>
    %12 = tpu.matmul %1, %11, %cst_7 {dimension_numbers = #tpu.dot_dimension_numbers<[1], [0], [0], [1], [0, 0, 1, 1], [], []>} : vector<8x256xbf16>, vector<256x128xbf16>, vector<8x128xf32> -> vector<8x128xf32>
    %13 = arith.addf %12, %8 : vector<8x128xf32>
    %cst_8 = arith.constant 0.000000e+00 : f32
    %14 = vector.broadcast %cst_8 : f32 to vector<8x128xf32>
    %15 = arith.maximumf %13, %14 : vector<8x128xf32>
    %16 = arith.truncf %15 : vector<8x128xf32> to vector<8x128xbf16>
    %c0_9 = arith.constant 0 : index
    %c0_10 = arith.constant 0 : index
    %17 = vector.load %arg4[%c0_9, %c0_10] : memref<128x128xbf16, #tpu.memory_space<vmem>>, vector<128x128xbf16>
    %cst_11 = arith.constant dense<0.000000e+00> : vector<8x128xf32>
    %18 = tpu.matmul %16, %17, %cst_11 {dimension_numbers = #tpu.dot_dimension_numbers<[1], [0], [0], [1], [0, 0, 1, 1], [], []>} : vector<8x128xbf16>, vector<128x128xbf16>, vector<8x128xf32> -> vector<8x128xf32>
    %c0_12 = arith.constant 0 : index
    %c0_13 = arith.constant 0 : index
    %19 = vector.load %arg5[%c0_12, %c0_13] : memref<1x128xf32, #tpu.memory_space<vmem>>, vector<1x128xf32>
    %20 = vector.broadcast %19 : vector<1x128xf32> to vector<8x128xf32>
    %21 = arith.addf %18, %20 : vector<8x128xf32>
    %cst_14 = arith.constant 0.000000e+00 : f32
    %22 = vector.broadcast %cst_14 : f32 to vector<8x128xf32>
    %23 = arith.maximumf %21, %22 : vector<8x128xf32>
    %24 = arith.truncf %23 : vector<8x128xf32> to vector<8x128xbf16>
    %c0_15 = arith.constant 0 : index
    %c0_16 = arith.constant 0 : index
    %25 = vector.load %arg6[%c0_15, %c0_16] : memref<128x128xbf16, #tpu.memory_space<vmem>>, vector<128x128xbf16>
    %cst_17 = arith.constant dense<0.000000e+00> : vector<8x128xf32>
    %26 = tpu.matmul %24, %25, %cst_17 {dimension_numbers = #tpu.dot_dimension_numbers<[1], [0], [0], [1], [0, 0, 1, 1], [], []>} : vector<8x128xbf16>, vector<128x128xbf16>, vector<8x128xf32> -> vector<8x128xf32>
    %c0_18 = arith.constant 0 : index
    %c0_19 = arith.constant 0 : index
    %27 = vector.load %arg7[%c0_18, %c0_19] : memref<1x128xf32, #tpu.memory_space<vmem>>, vector<1x128xf32>
    %28 = vector.broadcast %27 : vector<1x128xf32> to vector<8x128xf32>
    %29 = arith.addf %26, %28 : vector<8x128xf32>
    %cst_20 = arith.constant 0.000000e+00 : f32
    %30 = vector.broadcast %cst_20 : f32 to vector<8x128xf32>
    %31 = arith.maximumf %29, %30 : vector<8x128xf32>
    %32 = arith.truncf %31 : vector<8x128xf32> to vector<8x128xbf16>
    %c0_21 = arith.constant 0 : index
    %c0_22 = arith.constant 0 : index
    %33 = vector.load %arg8[%c0_21, %c0_22] : memref<128x128xbf16, #tpu.memory_space<vmem>>, vector<128x128xbf16>
    %cst_23 = arith.constant dense<0.000000e+00> : vector<8x128xf32>
    %34 = tpu.matmul %32, %33, %cst_23 {dimension_numbers = #tpu.dot_dimension_numbers<[1], [0], [0], [1], [0, 0, 1, 1], [], []>} : vector<8x128xbf16>, vector<128x128xbf16>, vector<8x128xf32> -> vector<8x128xf32>
    %35 = arith.addf %34, %9 : vector<8x128xf32>
    %36 = vector.extract_strided_slice %35 {offsets = [0, 0], sizes = [8, 16], strides = [1, 1]} : vector<8x128xf32> to vector<8x16xf32>
    %37 = vector.extract_strided_slice %35 {offsets = [0, 64], sizes = [8, 16], strides = [1, 1]} : vector<8x128xf32> to vector<8x16xf32>
    %cst_24 = arith.constant 5.000000e-01 : f32
    %38 = vector.broadcast %cst_24 : f32 to vector<8x16xf32>
    %39 = arith.mulf %38, %37 : vector<8x16xf32>
    %40 = math.exp %39 : vector<8x16xf32>
    %41 = arith.mulf %40, %5 : vector<8x16xf32>
    %42 = arith.addf %36, %41 : vector<8x16xf32>
    %43 = arith.truncf %42 : vector<8x16xf32> to vector<8x16xbf16>
    %c0_25 = arith.constant 0 : index
    %c0_26 = arith.constant 0 : index
    %44 = vector.load %arg10[%c0_25, %c0_26] : memref<16x128xbf16, #tpu.memory_space<vmem>>, vector<16x128xbf16>
    %cst_27 = arith.constant dense<0.000000e+00> : vector<8x128xf32>
    %45 = tpu.matmul %43, %44, %cst_27 {dimension_numbers = #tpu.dot_dimension_numbers<[1], [0], [0], [1], [0, 0, 1, 1], [], []>} : vector<8x16xbf16>, vector<16x128xbf16>, vector<8x128xf32> -> vector<8x128xf32>
    %46 = arith.addf %45, %10 : vector<8x128xf32>
    %cst_28 = arith.constant 0.000000e+00 : f32
    %47 = vector.broadcast %cst_28 : f32 to vector<8x128xf32>
    %48 = arith.maximumf %46, %47 : vector<8x128xf32>
    %49 = arith.truncf %48 : vector<8x128xf32> to vector<8x128xbf16>
    %c0_29 = arith.constant 0 : index
    %c0_30 = arith.constant 0 : index
    %50 = vector.load %arg11[%c0_29, %c0_30] : memref<128x128xbf16, #tpu.memory_space<vmem>>, vector<128x128xbf16>
    %cst_31 = arith.constant dense<0.000000e+00> : vector<8x128xf32>
    %51 = tpu.matmul %49, %50, %cst_31 {dimension_numbers = #tpu.dot_dimension_numbers<[1], [0], [0], [1], [0, 0, 1, 1], [], []>} : vector<8x128xbf16>, vector<128x128xbf16>, vector<8x128xf32> -> vector<8x128xf32>
    %c0_32 = arith.constant 0 : index
    %c0_33 = arith.constant 0 : index
    %52 = vector.load %arg12[%c0_32, %c0_33] : memref<1x128xf32, #tpu.memory_space<vmem>>, vector<1x128xf32>
    %53 = vector.broadcast %52 : vector<1x128xf32> to vector<8x128xf32>
    %54 = arith.addf %51, %53 : vector<8x128xf32>
    %cst_34 = arith.constant 0.000000e+00 : f32
    %55 = vector.broadcast %cst_34 : f32 to vector<8x128xf32>
    %56 = arith.maximumf %54, %55 : vector<8x128xf32>
    %57 = arith.truncf %56 : vector<8x128xf32> to vector<8x128xbf16>
    %c0_35 = arith.constant 0 : index
    %c0_36 = arith.constant 0 : index
    %58 = vector.load %arg13[%c0_35, %c0_36] : memref<128x128xbf16, #tpu.memory_space<vmem>>, vector<128x128xbf16>
    %cst_37 = arith.constant dense<0.000000e+00> : vector<8x128xf32>
    %59 = tpu.matmul %57, %58, %cst_37 {dimension_numbers = #tpu.dot_dimension_numbers<[1], [0], [0], [1], [0, 0, 1, 1], [], []>} : vector<8x128xbf16>, vector<128x128xbf16>, vector<8x128xf32> -> vector<8x128xf32>
    %c0_38 = arith.constant 0 : index
    %c0_39 = arith.constant 0 : index
    %60 = vector.load %arg14[%c0_38, %c0_39] : memref<1x128xf32, #tpu.memory_space<vmem>>, vector<1x128xf32>
    %61 = vector.broadcast %60 : vector<1x128xf32> to vector<8x128xf32>
    %62 = arith.addf %59, %61 : vector<8x128xf32>
    %cst_40 = arith.constant 0.000000e+00 : f32
    %63 = vector.broadcast %cst_40 : f32 to vector<8x128xf32>
    %64 = arith.maximumf %62, %63 : vector<8x128xf32>
    %65 = arith.truncf %64 : vector<8x128xf32> to vector<8x128xbf16>
    %c0_41 = arith.constant 0 : index
    %c0_42 = arith.constant 0 : index
    %66 = vector.load %arg15[%c0_41, %c0_42] : memref<128x256xbf16, #tpu.memory_space<vmem>>, vector<128x256xbf16>
    %cst_43 = arith.constant dense<0.000000e+00> : vector<8x256xf32>
    %67 = tpu.matmul %65, %66, %cst_43 {dimension_numbers = #tpu.dot_dimension_numbers<[1], [0], [0], [1], [0, 0, 1, 1], [], []>} : vector<8x128xbf16>, vector<128x256xbf16>, vector<8x256xf32> -> vector<8x256xf32>
    %c0_44 = arith.constant 0 : index
    %c0_45 = arith.constant 0 : index
    %68 = vector.load %arg16[%c0_44, %c0_45] : memref<1x256xf32, #tpu.memory_space<vmem>>, vector<1x256xf32>
    %69 = vector.broadcast %68 : vector<1x256xf32> to vector<8x256xf32>
    %70 = arith.addf %67, %69 : vector<8x256xf32>
    %71 = arith.negf %70 : vector<8x256xf32>
    %72 = math.exp %71 : vector<8x256xf32>
    %cst_46 = arith.constant 1.000000e+00 : f32
    %73 = vector.broadcast %cst_46 : f32 to vector<8x256xf32>
    %74 = arith.addf %73, %72 : vector<8x256xf32>
    %75 = arith.divf %73, %74 : vector<8x256xf32>
    %c0_47 = arith.constant 0 : index
    %c0_48 = arith.constant 0 : index
    %76 = vector.load %arg17[%c0_47, %c0_48] : memref<8x256xf32, #tpu.memory_space<vmem>>, vector<8x256xf32>
    tpu.vector_store %arg17[%c0_47, %c0_48], %75 {strides = array<i32>} : memref<8x256xf32, #tpu.memory_space<vmem>>, vector<8x256xf32>,
    %c0_49 = arith.constant 0 : index
    %c0_50 = arith.constant 0 : index
    %77 = vector.load %arg18[%c0_49, %c0_50] : memref<8x128xf32, #tpu.memory_space<vmem>>, vector<8x128xf32>
    tpu.vector_store %arg18[%c0_49, %c0_50], %35 {strides = array<i32>} : memref<8x128xf32, #tpu.memory_space<vmem>>, vector<8x128xf32>,
    return
  }
  func.func @transform_0(%arg0: i32) -> (i32, i32) {
    %c0_i32 = arith.constant 0 : i32
    %c0_i32_0 = arith.constant 0 : i32
    return %arg0, %c0_i32 : i32, i32
  }
  func.func @transform_1(%arg0: i32) -> (i32, i32) {
    %c0_i32 = arith.constant 0 : i32
    %c0_i32_0 = arith.constant 0 : i32
    return %arg0, %c0_i32 : i32, i32
  }
  func.func @transform_2(%arg0: i32) -> (i32, i32) {
    %c0_i32 = arith.constant 0 : i32
    %c0_i32_0 = arith.constant 0 : i32
    %c0_i32_1 = arith.constant 0 : i32
    return %c0_i32, %c0_i32_0 : i32, i32
  }
  func.func @transform_3(%arg0: i32) -> (i32, i32) {
    %c0_i32 = arith.constant 0 : i32
    %c0_i32_0 = arith.constant 0 : i32
    %c0_i32_1 = arith.constant 0 : i32
    return %c0_i32, %c0_i32_0 : i32, i32
  }
  func.func @transform_4(%arg0: i32) -> (i32, i32) {
    %c0_i32 = arith.constant 0 : i32
    %c0_i32_0 = arith.constant 0 : i32
    %c0_i32_1 = arith.constant 0 : i32
    return %c0_i32, %c0_i32_0 : i32, i32
  }
  func.func @transform_5(%arg0: i32) -> (i32, i32) {
    %c0_i32 = arith.constant 0 : i32
    %c0_i32_0 = arith.constant 0 : i32
    %c0_i32_1 = arith.constant 0 : i32
    return %c0_i32, %c0_i32_0 : i32, i32
  }
  func.func @transform_6(%arg0: i32) -> (i32, i32) {
    %c0_i32 = arith.constant 0 : i32
    %c0_i32_0 = arith.constant 0 : i32
    %c0_i32_1 = arith.constant 0 : i32
    return %c0_i32, %c0_i32_0 : i32, i32
  }
  func.func @transform_7(%arg0: i32) -> (i32, i32) {
    %c0_i32 = arith.constant 0 : i32
    %c0_i32_0 = arith.constant 0 : i32
    %c0_i32_1 = arith.constant 0 : i32
    return %c0_i32, %c0_i32_0 : i32, i32
  }
  func.func @transform_8(%arg0: i32) -> (i32, i32) {
    %c0_i32 = arith.constant 0 : i32
    %c0_i32_0 = arith.constant 0 : i32
    %c0_i32_1 = arith.constant 0 : i32
    return %c0_i32, %c0_i32_0 : i32, i32
  }
  func.func @transform_9(%arg0: i32) -> (i32, i32) {
    %c0_i32 = arith.constant 0 : i32
    %c0_i32_0 = arith.constant 0 : i32
    %c0_i32_1 = arith.constant 0 : i32
    return %c0_i32, %c0_i32_0 : i32, i32
  }
  func.func @transform_10(%arg0: i32) -> (i32, i32) {
    %c0_i32 = arith.constant 0 : i32
    %c0_i32_0 = arith.constant 0 : i32
    %c0_i32_1 = arith.constant 0 : i32
    return %c0_i32, %c0_i32_0 : i32, i32
  }
  func.func @transform_11(%arg0: i32) -> (i32, i32) {
    %c0_i32 = arith.constant 0 : i32
    %c0_i32_0 = arith.constant 0 : i32
    %c0_i32_1 = arith.constant 0 : i32
    return %c0_i32, %c0_i32_0 : i32, i32
  }
  func.func @transform_12(%arg0: i32) -> (i32, i32) {
    %c0_i32 = arith.constant 0 : i32
    %c0_i32_0 = arith.constant 0 : i32
    %c0_i32_1 = arith.constant 0 : i32
    return %c0_i32, %c0_i32_0 : i32, i32
  }
  func.func @transform_13(%arg0: i32) -> (i32, i32) {
    %c0_i32 = arith.constant 0 : i32
    %c0_i32_0 = arith.constant 0 : i32
    %c0_i32_1 = arith.constant 0 : i32
    return %c0_i32, %c0_i32_0 : i32, i32
  }
  func.func @transform_14(%arg0: i32) -> (i32, i32) {
    %c0_i32 = arith.constant 0 : i32
    %c0_i32_0 = arith.constant 0 : i32
    %c0_i32_1 = arith.constant 0 : i32
    return %c0_i32, %c0_i32_0 : i32, i32
  }
  func.func @transform_15(%arg0: i32) -> (i32, i32) {
    %c0_i32 = arith.constant 0 : i32
    %c0_i32_0 = arith.constant 0 : i32
    %c0_i32_1 = arith.constant 0 : i32
    return %c0_i32, %c0_i32_0 : i32, i32
  }
  func.func @transform_16(%arg0: i32) -> (i32, i32) {
    %c0_i32 = arith.constant 0 : i32
    %c0_i32_0 = arith.constant 0 : i32
    return %arg0, %c0_i32 : i32, i32
  }
  func.func @transform_17(%arg0: i32) -> (i32, i32) {
    %c0_i32 = arith.constant 0 : i32
    %c0_i32_0 = arith.constant 0 : i32
    return %arg0, %c0_i32 : i32, i32
  }
}

</mosaic_0001>

<bundles_post_ra>
// kernel: cvae_forward.1
= control target key start
LH: loop header
LB: loop body
LE: loop exit
PB: predicated region body
PF: predicated region fallthrough
CT: control target
= control target key end

     0   :  { %vm82_vm0 = vcmask 130048   ;;  %s1735_s8 = inlined_call_operand.vmem [shape: bf16[16,384], index: 8, kind: input, shape index: {}]   ;;  %s1736_s2 = inlined_call_operand.vmem [shape: bf16[256,128], index: 2, kind: input, shape index: {}]   ;;  %s1737_s1 = inlined_call_operand.vmem [shape: bf16[8,32], index: 1, kind: input, shape index: {}]   ;;  %s1738_s0 = inlined_call_operand.vmem [shape: f32[8,256], index: 0, kind: input, shape index: {}]   ;;  %s1739_s4 = inlined_call_operand.vmem [shape: f32[1,128], index: 4, kind: input, shape index: {}]   ;;  %s1740_s3 = inlined_call_operand.vmem [shape: bf16[128,128], index: 3, kind: input, shape index: {}]   ;;  %s1741_s5 = inlined_call_operand.vmem [shape: bf16[128,128], index: 5, kind: input, shape index: {}]   ;;  %s1742_s6 = inlined_call_operand.vmem [shape: f32[1,128], index: 6, kind: input, shape index: {}]   ;;  %s1743_s7 = inlined_call_operand.vmem [shape: bf16[128,128], index: 7, kind: input, shape index: {}]   ;;  %s1744_s9 = inlined_call_operand.vmem [shape: bf16[16,128], index: 9, kind: input, shape index: {}]   ;;  %s1745_s17 = inlined_call_operand.vmem [shape: f32[8,128], index: 17, kind: output, shape index: {1}]   ;;  %s1746_s10 = inlined_call_operand.vmem [shape: bf16[128,128], index: 10, kind: input, shape index: {}]   ;;  %s1747_s11 = inlined_call_operand.vmem [shape: f32[1,128], index: 11, kind: input, shape index: {}]   ;;  %s1748_s12 = inlined_call_operand.vmem [shape: bf16[128,128], index: 12, kind: input, shape index: {}]   ;;  %s1749_s13 = inlined_call_operand.vmem [shape: f32[1,128], index: 13, kind: input, shape index: {}]   ;;  %s1750_s14 = inlined_call_operand.vmem [shape: bf16[128,256], index: 14, kind: input, shape index: {}]   ;;  %s1751_s15 = inlined_call_operand.vmem [shape: f32[1,256], index: 15, kind: input, shape index: {}]   ;;  %s1752_s16 = inlined_call_operand.vmem [shape: f32[8,256], index: 16, kind: output, shape index: {0}]  }
   0x1   :  { %1755 = sst [smem:[#allocation2_spill]] %s1735_s8  ;;  %v1419_v6 = vld [vmem:[%s1737_s1] sm:$0xf]  ;;  %v57_v24 = vld [vmem:[%s1738_s0 + $0x8] sm:$0xff]  ;;  %v1243_v27 = vld [vmem:[%s1740_s3 + $0x38] sm:$0xff] }
   0x2   :  { %1756 = sst [smem:[#allocation3_spill]] %s1736_s2  ;;  %v56_v22 = vld [vmem:[%s1738_s0] sm:$0xff]  ;;  %v59_v26 = vpack.c.bf16 %v57_v24, %v57_v24  ;;  %v1242_v28 = vld [vmem:[%s1740_s3 + $0x30] sm:$0xff]  ;;  %v1241_v29 = vld [vmem:[%s1740_s3 + $0x28] sm:$0xff] }
   0x3   :  { %s1757_s26 = sld [smem:[#allocation2_spill]]  ;;  %v58_v25 = vpack.c.bf16 %v56_v22, %v56_v22  ;;  %v1240_v30 = vld [vmem:[%s1740_s3 + $0x20] sm:$0xff]  ;;  %v1239_v31 = vld [vmem:[%s1740_s3 + $0x18] sm:$0xff]  ;;  %v1238_v32 = vld [vmem:[%s1740_s3 + $0x10] sm:$0xff] }
   0x4   :  { %s1758_s30 = sld [smem:[#allocation3_spill]]  ;;  %v1237_v34 = vld [vmem:[%s1740_s3 + $0x8] sm:$0xff]  ;;  %v1236_v35 = vld [vmem:[%s1740_s3] sm:$0xff]  ;;  %v1251_v40 = vld [vmem:[%s1741_s5 + $0x38] sm:$0xff] }
   0x5   :  { %v1250_v42 = vld [vmem:[%s1741_s5 + $0x30] sm:$0xff]  ;;  %v1249_v44 = vld [vmem:[%s1741_s5 + $0x28] sm:$0xff]  ;;  %v1248_v45 = vld [vmem:[%s1741_s5 + $0x20] sm:$0xff] }
   0x6   :  { %v1247_v46 = vld [vmem:[%s1741_s5 + $0x18] sm:$0xff]  ;;  %v1246_v48 = vld [vmem:[%s1741_s5 + $0x10] sm:$0xff]  ;;  %v1245_v56 = vld [vmem:[%s1741_s5 + $0x8] sm:$0xff] }
   0x7   :  { %v1244_v57 = vld [vmem:[%s1741_s5] sm:$0xff]  ;;  %v1259_v58 = vld [vmem:[%s1743_s7 + $0x38] sm:$0xff]  ;;  %v1258_v59 = vld [vmem:[%s1743_s7 + $0x30] sm:$0xff] }
   0x8   :  { %v1257_v61 = vld [vmem:[%s1743_s7 + $0x28] sm:$0xff]  ;;  %v1256_v62 = vld [vmem:[%s1743_s7 + $0x20] sm:$0xff] }
   0x9   :  { %v909_v0 = vld [vmem:[%s1757_s26] sm:$0xf]  ;;  %v1218_v1 = vld [vmem:[%s1757_s26 + $0x8] sm:$0xf0]  ;;  %v1217_v9 = vld [vmem:[%s1757_s26 + $0x4] sm:$0xf] }
   0xa   :  { %v1227_v2 = vld [vmem:[%s1758_s30 + $0x38] sm:$0xff]  ;;  %v910_v3 = vor.u32 %v1218_v1, %v909_v0  ;;  %v1226_v5 = vld [vmem:[%s1758_s30 + $0x30] sm:$0xff]  ;;  %v1225_v8 = vld [vmem:[%s1758_s30 + $0x28] sm:$0xff] }
   0xb   :  { %v1235_v4 = vld [vmem:[%s1758_s30 + $0x78] sm:$0xff]  ;;  %253 = vmatpush.bf16.msra.mxu3 %v1227_v2  ;;  %v1234_v7 = vld [vmem:[%s1758_s30 + $0x70] sm:$0xff]  ;;  %v1233_v11 = vld [vmem:[%s1758_s30 + $0x68] sm:$0xff] }
   0xc   :  { %93 = vmatpush.bf16.msra.mxu0 %v910_v3  ;;  %v911_v10 = vld [vmem:[%s1757_s26 + $0xc] sm:$0xf0]  ;;  %v1224_v13 = vld [vmem:[%s1758_s30 + $0x20] sm:$0xff]  ;;  %v1223_v15 = vld [vmem:[%s1758_s30 + $0x18] sm:$0xff] }
   0xd   :  { %v914_v12 = vor.u32 %v1217_v9, %v911_v10  ;;  %v1232_v14 = vld [vmem:[%s1758_s30 + $0x60] sm:$0xff]  ;;  %v1231_v16 = vld [vmem:[%s1758_s30 + $0x58] sm:$0xff]  ;;  %v1222_v17 = vld [vmem:[%s1758_s30 + $0x10] sm:$0xff] }
   0xe   :  { %v1230_v18 = vld [vmem:[%s1758_s30 + $0x50] sm:$0xff]  ;;  %v1221_v19 = vld [vmem:[%s1758_s30 + $0x8] sm:$0xff]  ;;  %v1220_v21 = vld [vmem:[%s1758_s30] sm:$0xff] }
   0xf   :  { %254 = vmatpush.bf16.msra.mxu3 %v1226_v5  ;;  %919 = vmatmul.msk.bf16.vlgmr.msra.gmra.mxu0 %vm82_vm0, %v1419_v6  ;;  %v1229_v20 = vld [vmem:[%s1758_s30 + $0x48] sm:$0xff]  ;;  %v1228_v23 = vld [vmem:[%s1758_s30 + $0x40] sm:$0xff]  ;;  %v1219_v38 = vld [vmem:[%s1757_s26 + $0x10] sm:$0xf0] }
  0x10   :  { %266 = vmatpush.bf16.msrb.mxu0 %v1235_v4  ;;  %106 = vmatpush.bf16.msra.mxu1 %v914_v12  ;;  %v917_v37 = vld [vmem:[%s1757_s26 + $0x8] sm:$0xf]  ;;  %v1255_v0 = vld [vmem:[%s1743_s7 + $0x18] sm:$0xff]  ;;  %v1254_v1 = vld [vmem:[%s1743_s7 + $0x10] sm:$0xff] }
  0x11   :  { %v918_v41 = vor.u32 %v1219_v38, %v917_v37  ;;  %v1295_v2 = vld [vmem:[%s1739_s4] ss:$0 sm:$0xff]  ;;  %v1253_v9 = vld [vmem:[%s1743_s7 + $0x8] sm:$0xff]  ;;  %s1309_s4 = smov 48   ;;  %v1276_v37 = vld [vmem:[%s1748_s12 + $0x38] sm:$0xff] }
  0x12   :  { %v1252_v10 = vld [vmem:[%s1743_s7] sm:$0xff]  ;;  %v1275_v38 = vld [vmem:[%s1748_s12 + $0x30] sm:$0xff] }
  0x13   :  { %255 = vmatpush.bf16.msra.mxu3 %v1225_v8  ;;  %920 = vmatmul.msk.bf16.vlgmr.msra.gmra.mxu1 %vm82_vm0, %v1419_v6  ;;  %v1296_v12 = vld [vmem:[%s1742_s6] ss:$0 sm:$0xff]  ;;  %s1310_s6 = smov 64  }
  0x14   :  { %267 = vmatpush.bf16.msrb.mxu0 %v1234_v7  ;;  %349 = vmatpush.bf16.msrb.mxu1 %v1243_v27  ;;  %v1267_v27 = vld [vmem:[%s1746_s10 + $0x30] sm:$0xff] }
  0x15   :  { %119 = vmatpush.bf16.msra.mxu2 %v918_v41  ;;  %v1272_v41 = vld [vmem:[%s1748_s12 + $0x18] sm:$0xff] }
  0x17   :  { %256 = vmatpush.bf16.msra.mxu3 %v1224_v13 }
  0x18   :  { %268 = vmatpush.bf16.msrb.mxu0 %v1233_v11  ;;  %350 = vmatpush.bf16.msrb.mxu1 %v1242_v28  ;;  %v61_v11 = vunpack.c.l.bf16 %v1419_v6  ;;  %v1266_v28 = vld [vmem:[%s1746_s10 + $0x28] sm:$0xff] }
  0x19   :  { %432 = vmatpush.bf16.msrb.mxu2 %v1251_v40  ;;  %v1273_v40 = vld [vmem:[%s1748_s12 + $0x20] sm:$0xff] }
  0x1a   :  { %921 = vmatmul.msk.bf16.vlgmr.msra.gmra.mxu2 %vm82_vm0, %v1419_v6  ;;  %528 = vrot.lane.b32.xlu0 %v61_v11, %s1309_s4  ;;  %v1177_v11 = vld [vmem:[%s1750_s14 + $0x30] sm:$0xf] }
  0x1b   :  { %257 = vmatpush.bf16.msra.mxu3 %v1223_v15 }
  0x1c   :  { %269 = vmatpush.bf16.msrb.mxu0 %v1232_v14  ;;  %351 = vmatpush.bf16.msrb.mxu1 %v1241_v29  ;;  %v1265_v29 = vld [vmem:[%s1746_s10 + $0x20] sm:$0xff] }
  0x1d   :  { %433 = vmatpush.bf16.msrb.mxu2 %v1250_v42  ;;  %v1271_v42 = vld [vmem:[%s1748_s12 + $0x10] sm:$0xff] }
  0x1f   :  { %258 = vmatpush.bf16.msra.mxu3 %v1222_v17 }
  0x20   :  { %270 = vmatpush.bf16.msrb.mxu0 %v1231_v16  ;;  %352 = vmatpush.bf16.msrb.mxu1 %v1240_v30  ;;  %v1264_v30 = vld [vmem:[%s1746_s10 + $0x18] sm:$0xff] }
  0x21   :  { %434 = vmatpush.bf16.msrb.mxu2 %v1249_v44 }
  0x23   :  { %259 = vmatpush.bf16.msra.mxu3 %v1221_v19 }
  0x24   :  { %271 = vmatpush.bf16.msrb.mxu0 %v1230_v18  ;;  %353 = vmatpush.bf16.msrb.mxu1 %v1239_v31  ;;  %v1260_v18 = vld [vmem:[%s1744_s9] sm:$0xff]  ;;  %v1263_v31 = vld [vmem:[%s1746_s10 + $0x10] sm:$0xff] }
  0x25   :  { %435 = vmatpush.bf16.msrb.mxu2 %v1248_v45 }
  0x27   :  { %260 = vmatpush.bf16.msra.mxu3 %v1220_v21 }
  0x28   :  { %272 = vmatpush.bf16.msrb.mxu0 %v1229_v20  ;;  %354 = vmatpush.bf16.msrb.mxu1 %v1238_v32 }
  0x29   :  { %436 = vmatpush.bf16.msrb.mxu2 %v1247_v46 }
  0x2a   :  { %261 = vmatmul.bf16.vlgmr.msra.gmra.mxu3 %v58_v25 }
  0x2b   :  { %511 = vmatpush.bf16.msrb.mxu3 %v1259_v58  ;;  %v1289_v58 = vld [vmem:[%s1750_s14 + $0x64] sm:$0xf] }
  0x2c   :  { %273 = vmatpush.bf16.msrb.mxu0 %v1228_v23  ;;  %355 = vmatpush.bf16.msrb.mxu1 %v1237_v34 }
  0x2d   :  { %437 = vmatpush.bf16.msrb.mxu2 %v1246_v48  ;;  %v1270_v48 = vld [vmem:[%s1748_s12 + $0x8] sm:$0xff] }
  0x2f   :  { %274 = vmatmul.bf16.vlgmr.msrb.gmra.mxu0 %v59_v26  ;;  %512 = vmatpush.bf16.msrb.mxu3 %v1258_v59  ;;  %v1268_v26 = vld [vmem:[%s1746_s10 + $0x38] sm:$0xff]  ;;  %v1203_v59 = vld [vmem:[%s1750_s14 + $0x68] sm:$0xf0] }
  0x30   :  { %356 = vmatpush.bf16.msrb.mxu1 %v1236_v35  ;;  %556 = vmatpush.bf16.msra.mxu0 %v1260_v18  ;;  %v1262_v35 = vld [vmem:[%s1746_s10 + $0x8] sm:$0xff] }
  0x31   :  { %438 = vmatpush.bf16.msrb.mxu2 %v1245_v56  ;;  %v1290_v56 = vld [vmem:[%s1750_s14 + $0x64] sm:$0xf0] }
  0x32   :  { %v1282_v18 = vld [vmem:[%s1750_s14 + $0x24] sm:$0xf0] }
  0x33   :  { %513 = vmatpush.bf16.msrb.mxu3 %v1257_v61  ;;  %v1206_v61 = vor.u32 %v1289_v58, %v1203_v59 }
  0x34   :  { %632 = vmatpush.bf16.msra.mxu1 %v1268_v26 }
  0x35   :  { %439 = vmatpush.bf16.msrb.mxu2 %v1244_v57 }
  0x37   :  { %514 = vmatpush.bf16.msrb.mxu3 %v1256_v62  ;;  %v1193_v62 = vld [vmem:[%s1750_s14 + $0x50] sm:$0xf] }
  0x38   :  { %633 = vmatpush.bf16.msra.mxu1 %v1267_v27 }
  0x39   :  { %715 = vmatpush.bf16.msra.mxu2 %v1276_v37 }
  0x3b   :  { %515 = vmatpush.bf16.msrb.mxu3 %v1255_v0  ;;  %v1287_v0 = vld [vmem:[%s1750_s14 + $0x54] sm:$0xf] }
  0x3c   :  { %634 = vmatpush.bf16.msra.mxu1 %v1266_v28  ;;  %v1161_v28 = vld [vmem:[%s1750_s14 + $0x10] sm:$0xf] }
  0x3d   :  { %716 = vmatpush.bf16.msra.mxu2 %v1275_v38  ;;  %v1155_v38 = vld [vmem:[%s1750_s14 + $0x8] sm:$0xf0] }
  0x3f   :  { %516 = vmatpush.bf16.msrb.mxu3 %v1254_v1  ;;  %v1195_v1 = vld [vmem:[%s1750_s14 + $0x58] sm:$0xf0] }
  0x40   :  { %635 = vmatpush.bf16.msra.mxu1 %v1265_v29  ;;  %v1280_v29 = vld [vmem:[%s1750_s14 + $0x14] sm:$0xf0] }
  0x43   :  { %517 = vmatpush.bf16.msrb.mxu3 %v1253_v9 }
  0x44   :  { %636 = vmatpush.bf16.msra.mxu1 %v1264_v30  ;;  %v1279_v30 = vld [vmem:[%s1750_s14 + $0x14] sm:$0xf] }
  0x47   :  { %518 = vmatpush.bf16.msrb.mxu3 %v1252_v10 }
  0x48   :  { %637 = vmatpush.bf16.msra.mxu1 %v1263_v31  ;;  %v1162_v31 = vor.u32 %v1280_v29, %v1161_v28 }
  0x4c   :  { %638 = vmatpush.bf16.msra.mxu1 %v1262_v35  ;;  %v1278_v35 = vld [vmem:[%s1750_s14 + $0x4] sm:$0xf0] }
  0x8c   :  { %v95_v33 = vpop.f32.mrf.mxu0  ;;  %v529_v23 = vpop.permute.xlu0 %528 }
  0x90   :  { %v1506_v39 = vpop.f32.mrf.mxu1 }
  0x94   :  { %v97_v36 = vpop.f32.mrf.mxu0 }
  0x95   :  { %v1261_v36 = vld [vmem:[%s1746_s10] sm:$0xff] }
  0x96   :  { %639 = vmatpush.bf16.msra.mxu1 %v1261_v36  ;;  %v1277_v36 = vld [vmem:[%s1750_s14 + $0x4] sm:$0xf] }
  0x98   :  { %v110_v43 = vpop.f32.mrf.mxu1 }
  0x9d   :  { %v1540_v60 = vpop.f32.mrf.mxu2 }
  0xa5   :  { %v123_v63 = vpop.f32.mrf.mxu2 }
  0xa6   :  { %v1288_v63 = vld [vmem:[%s1750_s14 + $0x54] sm:$0xf0] }
  0xac   :  { %v275_v47 = vpop.f32.mrf.mxu0 }
  0xad   :  { %v262_v49 = vpop.f32.mrf.mxu3 }
  0xae   :  { %v263_v50 = vadd.f32 %v262_v49, %v95_v33  ;;  %v1269_v49 = vld [vmem:[%s1748_s12] sm:$0xff] }
  0xb0   :  { %v276_v51 = vadd.f32 %v275_v47, %v263_v50  ;;  %v1209_v50 = vld [vmem:[%s1750_s14 + $0x70] sm:$0xf] }
  0xb2   :  { %v279_v53 = vmax.f32 %v276_v51, 0.0  ;;  %v1292_v51 = vld [vmem:[%s1750_s14 + $0x74] sm:$0xf0] }
  0xb4   :  { %v277_v52 = vpop.f32.mrf.mxu0  ;;  %v280_v54 = vpack.c.bf16 %v279_v53, %v279_v53  ;;  %v1210_v53 = vor.u32 %v1292_v51, %v1209_v50 }
  0xb5   :  { %v264_v55 = vpop.f32.mrf.mxu3  ;;  %v1291_v52 = vld [vmem:[%s1750_s14 + $0x74] sm:$0xf] }
  0xb6   :  { %357 = vmatmul.bf16.vlgmr.msrb.gmra.mxu1 %v280_v54  ;;  %v1211_v54 = vld [vmem:[%s1750_s14 + $0x78] sm:$0xf0]  ;;  %v1201_v55 = vld [vmem:[%s1750_s14 + $0x60] sm:$0xf]  ;;  %832 = vmatpush.bf16.msrb.mxu0 %v1210_v53 }
  0xb7   :  { %v1214_v57 = vor.u32 %v1291_v52, %v1211_v54 }
  0xb9   :  { %845 = vmatpush.bf16.msra.mxu3 %v1214_v57 }
  0xbd   :  { %846 = vmatpush.bf16.msra.mxu3 %v1206_v61 }
 0x133   :  { %v358_v3 = vpop.f32.mrf.mxu1 }
 0x134   :  { %v359_v4 = vadd.f32 %v1295_v2, %v358_v3  ;;  %v1194_v2 = vor.u32 %v1288_v63, %v1193_v62  ;;  %v1198_v3 = vor.u32 %v1287_v0, %v1195_v1 }
 0x136   :  { %v362_v5 = vmax.f32 %v359_v4, 0.0  ;;  %v1185_v4 = vld [vmem:[%s1750_s14 + $0x40] sm:$0xf]  ;;  %847 = vmatpush.bf16.msra.mxu3 %v1198_v3 }
 0x138   :  { %v363_v7 = vpack.c.bf16 %v362_v5, %v362_v5  ;;  %v1286_v5 = vld [vmem:[%s1750_s14 + $0x44] sm:$0xf0] }
 0x139   :  { %v1186_v9 = vor.u32 %v1286_v5, %v1185_v4 }
 0x13a   :  { %440 = vmatmul.bf16.vlgmr.msrb.gmra.mxu2 %v363_v7  ;;  %v1285_v7 = vld [vmem:[%s1750_s14 + $0x44] sm:$0xf] }
 0x13b   :  { %v360_v8 = vpop.f32.mrf.mxu1 }
 0x13c   :  { %v1187_v8 = vld [vmem:[%s1750_s14 + $0x48] sm:$0xf0] }
 0x13d   :  { %v1190_v10 = vor.u32 %v1285_v7, %v1187_v8 }
 0x13f   :  { %848 = vmatpush.bf16.msra.mxu3 %v1190_v10 }
 0x1bd   :  { %v441_v13 = vpop.f32.mrf.mxu2 }
 0x1be   :  { %v442_v14 = vadd.f32 %v1296_v12, %v441_v13  ;;  %v1284_v12 = vld [vmem:[%s1750_s14 + $0x34] sm:$0xf0]  ;;  %v1283_v13 = vld [vmem:[%s1750_s14 + $0x34] sm:$0xf] }
 0x1c0   :  { %v445_v15 = vmax.f32 %v442_v14, 0.0  ;;  %v1179_v14 = vld [vmem:[%s1750_s14 + $0x38] sm:$0xf0] }
 0x1c2   :  { %v446_v16 = vpack.c.bf16 %v445_v15, %v445_v15  ;;  %v1178_v15 = vor.u32 %v1284_v12, %v1177_v11 }
 0x1c4   :  { %519 = vmatmul.bf16.vlgmr.msrb.gmra.mxu3 %v446_v16  ;;  %v1182_v16 = vor.u32 %v1283_v13, %v1179_v14 }
 0x1c5   :  { %v443_v17 = vpop.f32.mrf.mxu2 }
 0x1c6   :  { %v1169_v17 = vld [vmem:[%s1750_s14 + $0x20] sm:$0xf]  ;;  %849 = vmatpush.bf16.msra.mxu3 %v1182_v16 }
 0x247   :  { %v520_v19 = vpop.f32.mrf.mxu3 }
 0x248   :  { %v521_v6 = vadd.f32 %v520_v19, %v1506_v39  ;;  %v1274_v39 = vld [vmem:[%s1748_s12 + $0x28] sm:$0xff]  ;;  %v1281_v19 = vld [vmem:[%s1750_s14 + $0x24] sm:$0xf] }
 0x249   :  { %717 = vmatpush.bf16.msra.mxu2 %v1274_v39  ;;  %v1158_v39 = vor.u32 %v1277_v36, %v1155_v38 }
 0x24a   :  { %v524_v20 = vmul.f32 0.5, %v521_v6  ;;  %898 = vst [vmem:[%s1745_s17] sm:$0xff] %v521_v6 }
 0x24c   :  { %v525_v21 = vmul.f32 1.442695, %v524_v20  ;;  %v1170_v20 = vor.u32 %v1282_v18, %v1169_v17 }
 0x24d   :  { %718 = vmatpush.bf16.msra.mxu2 %v1273_v40  ;;  %v1298_v40 = vld [vmem:[%s1749_s13] ss:$0 sm:$0xff] }
 0x24e   :  { %1299 = vpow2.f32 %v525_v21 }
 0x24f   :  { %v522_v22 = vpop.f32.mrf.mxu3 }
 0x250   :  { %v1297_v22 = vld [vmem:[%s1747_s11] ss:$0 sm:$0xff] }
 0x251   :  { %719 = vmatpush.bf16.msra.mxu2 %v1272_v41 }
 0x254   :  { %v1300_v24 = vpop.eup %1299 }
 0x255   :  { %v531_v25 = vmul.f32 %v1300_v24, %v529_v23  ;;  %720 = vmatpush.bf16.msra.mxu2 %v1271_v42 }
 0x257   :  { %533 = vrot.lane.b32.xlu0 %v531_v25, %s1310_s6 }
 0x259   :  { %721 = vmatpush.bf16.msra.mxu2 %v1270_v48 }
 0x25d   :  { %722 = vmatpush.bf16.msra.mxu2 %v1269_v49 }
 0x2c9   :  { %v534_v32 = vpop.permute.xlu0 %533 }
 0x2ca   :  { %v536_v33 = vadd.f32 %v534_v32, %v521_v6  ;;  %v1171_v6 = vld [vmem:[%s1750_s14 + $0x28] sm:$0xf0]  ;;  %v1163_v32 = vld [vmem:[%s1750_s14 + $0x18] sm:$0xf0] }
 0x2cb   :  { %v1174_v21 = vor.u32 %v1281_v19, %v1171_v6 }
 0x2cc   :  { %v537_v34 = vpack.c.bf16 %v536_v33, %v536_v33  ;;  %v1166_v33 = vor.u32 %v1279_v30, %v1163_v32 }
 0x2cd   :  { %850 = vmatpush.bf16.msra.mxu3 %v1174_v21 }
 0x2ce   :  { %1086 = vmatmul.msk.bf16.vlgmr.msra.gmra.mxu0 %vm82_vm0, %v537_v34  ;;  %v1153_v34 = vld [vmem:[%s1750_s14] sm:$0xf] }
 0x2cf   :  { %v1154_v37 = vor.u32 %v1278_v35, %v1153_v34 }
 0x2d1   :  { %851 = vmatpush.bf16.msra.mxu3 %v1166_v33 }
 0x2d5   :  { %852 = vmatpush.bf16.msra.mxu3 %v1158_v39 }
 0x34b   :  { %v558_v43 = vpop.f32.mrf.mxu0 }
 0x34c   :  { %v559_v44 = vadd.f32 %v558_v43, %v1540_v60  ;;  %v1202_v60 = vor.u32 %v1290_v56, %v1201_v55 }
 0x34e   :  { %v562_v45 = vmax.f32 %v559_v44, 0.0  ;;  %833 = vmatpush.bf16.msrb.mxu0 %v1202_v60 }
 0x350   :  { %v563_v46 = vpack.c.bf16 %v562_v45, %v562_v45 }
 0x352   :  { %640 = vmatmul.bf16.vlgmr.msra.gmra.mxu1 %v563_v46  ;;  %834 = vmatpush.bf16.msrb.mxu0 %v1194_v2  ;;  %v746_v46 = vld [vmem:[%s1751_s15] sm:$0x3] }
 0x353   :  { %v560_v47 = vpop.f32.mrf.mxu0  ;;  %v749_v51 = vperm.slane %v746_v46, 1 }
 0x354   :  { %v748_v47 = vperm.slane %v746_v46, 0 }
 0x356   :  { %835 = vmatpush.bf16.msrb.mxu0 %v1186_v9 }
 0x35a   :  { %836 = vmatpush.bf16.msrb.mxu0 %v1178_v15 }
 0x35e   :  { %837 = vmatpush.bf16.msrb.mxu0 %v1170_v20 }
 0x362   :  { %838 = vmatpush.bf16.msrb.mxu0 %v1162_v31 }
 0x366   :  { %839 = vmatpush.bf16.msrb.mxu0 %v1154_v37 }
 0x3cf   :  { %v641_v23 = vpop.f32.mrf.mxu1 }
 0x3d0   :  { %v642_v24 = vadd.f32 %v1297_v22, %v641_v23 }
 0x3d2   :  { %v645_v25 = vmax.f32 %v642_v24, 0.0 }
 0x3d4   :  { %v646_v26 = vpack.c.bf16 %v645_v25, %v645_v25 }
 0x3d6   :  { %723 = vmatmul.bf16.vlgmr.msra.gmra.mxu2 %v646_v26 }
 0x3d7   :  { %v643_v27 = vpop.f32.mrf.mxu1 }
 0x459   :  { %v724_v41 = vpop.f32.mrf.mxu2 }
 0x45a   :  { %v725_v42 = vadd.f32 %v1298_v40, %v724_v41 }
 0x45c   :  { %v728_v43 = vmax.f32 %v725_v42, 0.0 }
 0x45e   :  { %v729_v44 = vpack.c.bf16 %v728_v43, %v728_v43 }
 0x460   :  { %840 = vmatmul.bf16.vlgmr.msrb.gmra.mxu0 %v729_v44  ;;  %853 = vmatmul.bf16.vlgmr.msra.gmra.mxu3 %v729_v44 }
 0x461   :  { %v726_v45 = vpop.f32.mrf.mxu2 }
 0x4dd   :  { %v841_v48 = vpop.f32.mrf.mxu0 }
 0x4de   :  { %v842_v49 = vadd.f32 %v841_v48, %v748_v47 }
 0x4e0   :  { %v1215_v50 = vmul.f32 -1.442695, %v842_v49 }
 0x4e2   :  { %1301 = vpow2.f32 %v1215_v50 }
 0x4e3   :  { %v854_v52 = vpop.f32.mrf.mxu3 }
 0x4e4   :  { %v855_v53 = vadd.f32 %v854_v52, %v749_v51 }
 0x4e5   :  { %v843_v54 = vpop.f32.mrf.mxu0 }
 0x4e6   :  { %v1216_v55 = vmul.f32 -1.442695, %v855_v53 }
 0x4e8   :  { %v1302_v56 = vpop.eup %1301  ;;  %1303 = vpow2.f32 %v1216_v55 }
 0x4e9   :  { %v864_v57 = vadd.f32 1.0, %v1302_v56 }
 0x4eb   :  { %1305 = vrcp.f32 %v864_v57  ;;  %v856_v58 = vpop.f32.mrf.mxu3  ;;  %v877_v0 = vand.u32 2147483648, %v864_v57  ;;  %v875_v2 = vand.u32 2147483647, %v864_v57  ;;  %vm871_vm2 = vweird.f32 %v864_v57 }
 0x4ed   :  { %v878_v7 = vor.u32 1.1754944e-38, %v877_v0  ;;  %vm876_vm4 = vcmp.eq.f32.partialorder %v875_v2, 8.507059e+37 }
 0x4ee   :  { %v1304_v59 = vpop.eup %1303 }
 0x4ef   :  { %v865_v60 = vadd.f32 1.0, %v1304_v59 }
 0x4f1   :  { %v1306_v61 = vpop.eup %1305  ;;  %1307 = vrcp.f32 %v865_v60  ;;  %v892_v11 = vand.u32 2147483648, %v865_v60  ;;  %v890_v13 = vand.u32 2147483647, %v865_v60  ;;  %vm886_vm6 = vweird.f32 %v865_v60 }
 0x4f2   :  { %v867_v62 = vmul.f32 %v1306_v61, %v864_v57  ;;  %vm872_vm1 = vweird.f32 %v1306_v61 }
 0x4f3   :  { %vm873_vm3 = vmor %vm871_vm2, %vm872_vm1  ;;  %v893_v15 = vor.u32 1.1754944e-38, %v892_v11  ;;  %vm891_vm8 = vcmp.eq.f32.partialorder %v890_v13, 8.507059e+37 }
 0x4f4   :  { %v868_v63 = vsub.f32 1.0, %v867_v62 }
 0x4f6   :  { %v869_v1 = vmul.f32 %v1306_v61, %v868_v63 }
 0x4f7   :  { %v1308_v3 = vpop.eup %1307 }
 0x4f8   :  { %v870_v4 = vadd.f32 %v1306_v61, %v869_v1  ;;  %v882_v5 = vmul.f32 %v1308_v3, %v865_v60  ;;  %vm887_vm5 = vweird.f32 %v1308_v3 }
 0x4f9   :  { %vm888_vm7 = vmor %vm886_vm6, %vm887_vm5 }
 0x4fa   :  { %v874_v8 = vsel %vm873_vm3, %v1306_v61, %v870_v4  ;;  %v883_v9 = vsub.f32 1.0, %v882_v5 }
 0x4fb   :  { %v879_v10 = vsel %vm876_vm4, %v878_v7, %v874_v8 }
 0x4fc   :  { %896 = vst [vmem:[%s1752_s16] sm:$0xff] %v879_v10  ;;  %v884_v12 = vmul.f32 %v1308_v3, %v883_v9 }
 0x4fe   :  { %v885_v14 = vadd.f32 %v1308_v3, %v884_v12 }
 0x500   :  { %v889_v16 = vsel %vm888_vm7, %v1308_v3, %v885_v14 }
 0x501   :  { %v894_v17 = vsel %vm891_vm8, %v893_v15, %v889_v16 }
 0x502   :  { %897 = vst [vmem:[%s1752_s16 + $0x8] sm:$0xff] %v894_v17 }

</bundles_post_ra>
